<compile_context>
chip_gen: v6e
topology: v6e:2x2x1
jax: 0.10.0
libtpu: 0.0.40
codegen_flags: <defaults>
</compile_context>

<pallas_src>
import math
import functools

import jax
import jax.numpy as jnp
from jax.experimental import pallas as pl
from jax.experimental.pallas import tpu as pltpu


def make_pe_table(d_model: int, max_len: int = 100) -> jnp.ndarray:
    """Deterministic buffer setup mirroring the PyTorch __init__."""
    position = jnp.arange(max_len, dtype=jnp.float32)[:, None]            # (max_len, 1)
    div_term = jnp.exp(
        jnp.arange(0, d_model, 2, dtype=jnp.float32) * (-math.log(10000.0) / d_model)
    )                                                                      # (d_model/2,)
    ang = position * div_term                                              # (max_len, d_model/2)
    pe = jnp.zeros((max_len, d_model), dtype=jnp.float32)
    pe = pe.at[:, 0::2].set(jnp.sin(ang))
    pe = pe.at[:, 1::2].set(jnp.cos(ang))
    return pe


def make_packed_tables(pe: jnp.ndarray) -> dict:
    """One-time (module init) precompute of the packed/replicated constants."""
    max_len, d_model = pe.shape

    # Lane-dense packing only when it is exact: positions must be exactly
    # representable through the DEFAULT-precision (bf16-operand) rep matmul.
    if d_model <= 128 and 128 % d_model == 0 and max_len <= 256:
        pack = 128 // d_model
    else:
        pack = 1                                   # lane-sparse fallback path
    d_out = pack * d_model
    L = pack * max_len

    # Block-diagonal replicated pe: row j*max_len+p, col j*d_model+d = pe[p, d].
    if pack == 1:
        pe_packed = pe
    else:
        eye = jnp.eye(pack, dtype=pe.dtype)
        pe_packed = jnp.einsum("jk,pd->jpkd", eye, pe).reshape(L, d_out)

    # Exact 3-plane bf16 split: hi + mid + lo == pe_packed to ~2^-25 relative,
    # so 3 DEFAULT-precision bf16 matmuls (f32 accumulate) reproduce the f32
    # gather exactly (one-hot LHS is exactly bf16).
    hi = pe_packed.astype(jnp.bfloat16)
    r1 = pe_packed - hi.astype(jnp.float32)
    mid = r1.astype(jnp.bfloat16)
    r2 = r1 - mid.astype(jnp.float32)
    lo = r2.astype(jnp.bfloat16)

    col = jnp.arange(L, dtype=jnp.int32)
    # blockind[j, c] = 1 iff c // max_len == j  (lane-replication matmul RHS)
    blockind = (
        (col[None, :] // max_len) == jnp.arange(pack, dtype=jnp.int32)[:, None]
    ).astype(jnp.float32)                                                  # (pack, L)
    localidx = (col % max_len).astype(jnp.float32)[None, :]                # (1, L)

    return dict(pe=pe, pe_hi=hi, pe_mid=mid, pe_lo=lo,
                blockind=blockind, localidx=localidx)


def _gather_kernel(pos_ref, blockind_ref, localidx_ref,
                   pe_hi_ref, pe_mid_ref, pe_lo_ref, o_ref, *, pack: int):
    # pos_ref:      (tm_p, pack) int32
    # blockind_ref: (pack, L)    f32  (constant, VMEM-resident)
    # localidx_ref: (1, L)       f32  (constant, VMEM-resident: iota % max_len)
    # pe_*_ref:     (L, d_out)   bf16 (constant, VMEM-resident planes)
    # o_ref:        (tm_p, d_out) f32 (lane-dense output tile)
    dn = (((1,), (0,)), ((), ()))

    if pack > 1:
        # Lane-replicate the pack positions across their max_len-column blocks
        # with one tiny MXU pass: rep[r, c] = pos[r, c // max_len].
        pos_f = pos_ref[...].astype(jnp.float32)                 # ints <= 255, exact
        rep = jax.lax.dot_general(pos_f, blockind_ref[...], dn,
                                  preferred_element_type=jnp.float32)   # (tm_p, L)
    else:
        rep = pos_ref[...].astype(jnp.float32)                   # (tm_p, 1) broadcasts

    # Single compare + single cast -> one-hot (0/1, exactly bf16-representable).
    one_hot = (rep == localidx_ref[...]).astype(jnp.bfloat16)    # (tm_p, L)

    # Exact f32 gather in 3 DEFAULT-precision MXU passes (hi/mid/lo planes).
    acc = jax.lax.dot_general(one_hot, pe_hi_ref[...], dn,
                              preferred_element_type=jnp.float32)
    acc = acc + jax.lax.dot_general(one_hot, pe_mid_ref[...], dn,
                                    preferred_element_type=jnp.float32)
    acc = acc + jax.lax.dot_general(one_hot, pe_lo_ref[...], dn,
                                    preferred_element_type=jnp.float32)
    o_ref[...] = acc


def _round_up(x: int, m: int) -> int:
    return ((x + m - 1) // m) * m


@functools.partial(jax.jit, static_argnames=("use_pallas",))
def positional_encoding_forward(tables: dict, positions: jnp.ndarray,
                                use_pallas=None) -> jnp.ndarray:
    """forward(positions) = pe[positions]; Pallas MXU one-hot gather for large n."""
    pe = tables["pe"]
    max_len, d_model = pe.shape

    # Clamp matches JAX gather semantics (PyTorch would raise on OOB indices).
    pos_flat = jnp.clip(positions.reshape(-1).astype(jnp.int32), 0, max_len - 1)
    n = pos_flat.shape[0]

    if use_pallas is None:
        use_pallas = n >= 4096          # kernel only pays off at large n
    if (not use_pallas) or n == 0:
        # Plain-XLA fast path: native gather beats kernel launch + padding here.
        return pe[pos_flat].reshape(positions.shape + (d_model,))

    pe_hi, pe_mid, pe_lo = tables["pe_hi"], tables["pe_mid"], tables["pe_lo"]
    blockind, localidx = tables["blockind"], tables["localidx"]
    L, d_out = pe_hi.shape
    pack = blockind.shape[0]

    rows = -(-n // pack)                            # packed output rows needed
    cap = 2048                                      # big tiles: amortize per-step cost
    if rows <= 16:
        tm_p = _round_up(rows, 8)
    else:
        # >= 2 grid blocks whenever rows is non-trivial (v7x dual-TC sharding).
        tm_p = min(cap, _round_up(-(-rows // 2), 8))
    rows_pad = _round_up(rows, tm_p)
    n_pad = rows_pad * pack
    num_blocks = rows_pad // tm_p

    pos_padded = jnp.zeros((n_pad,), jnp.int32).at[:n].set(pos_flat)
    pos2d = pos_padded.reshape(rows_pad, pack)

    kernel = functools.partial(_gather_kernel, pack=pack)

    # VMEM budget: resident constants + double-buffered pos/out tiles +
    # in-kernel rep (f32) / one_hot (bf16) temporaries + f32 accumulator + margin.
    est_bytes = (
        3 * L * d_out * 2                 # pe planes (bf16, resident)
        + pack * L * 4 + L * 4            # blockind + localidx (f32, resident)
        + 2 * tm_p * pack * 4             # positions tile (double-buffered)
        + 2 * tm_p * d_out * 4            # output tile (double-buffered)
        + tm_p * L * (4 + 2)              # rep (f32) + one_hot (bf16) temporaries
        + tm_p * d_out * 4                # f32 accumulator
        + 8 * 1024 * 1024                 # margin (lane padding 400->512, misc)
    )
    vmem_limit = int(min(100 * 1024 * 1024, max(32 * 1024 * 1024, est_bytes)))

    out = pl.pallas_call(
        kernel,
        out_shape=jax.ShapeDtypeStruct((rows_pad, d_out), jnp.float32),
        grid_spec=pltpu.PrefetchScalarGridSpec(
            num_scalar_prefetch=0,
            grid=(num_blocks,),
            in_specs=[
                pl.BlockSpec((tm_p, pack), lambda i: (i, 0)),   # positions tile
                pl.BlockSpec((pack, L), lambda i: (0, 0)),      # block indicator (resident)
                pl.BlockSpec((1, L), lambda i: (0, 0)),         # local row index (resident)
                pl.BlockSpec((L, d_out), lambda i: (0, 0)),     # pe hi plane (resident)
                pl.BlockSpec((L, d_out), lambda i: (0, 0)),     # pe mid plane (resident)
                pl.BlockSpec((L, d_out), lambda i: (0, 0)),     # pe lo plane (resident)
            ],
            out_specs=pl.BlockSpec((tm_p, d_out), lambda i: (i, 0)),
        ),
        compiler_params=pltpu.CompilerParams(
            dimension_semantics=("parallel",),
            vmem_limit_bytes=vmem_limit,
        ),
    )(pos2d, blockind, localidx, pe_hi, pe_mid, pe_lo)

    out_flat = out.reshape(n_pad, d_model)[:n]
    return out_flat.reshape(positions.shape + (d_model,))


if __name__ == "__main__":
    d_model = 32
    max_len = 100

    pe = make_pe_table(d_model, max_len)
    tables = make_packed_tables(pe)          # one-time "module init" precompute

    key = jax.random.PRNGKey(0)
    k1, k2 = jax.random.split(key)

    # Small example consistent with the module's usage: (batch, seq) index tensor.
    batch, seq = 2, 8
    positions = jax.random.randint(k1, (batch, seq), 0, max_len, dtype=jnp.int32)

    # Force the Pallas path at this small size so the kernel itself is exercised.
    out = jax.block_until_ready(
        positional_encoding_forward(tables, positions, use_pallas=True))
    ref = pe[positions]
    assert out.shape == (batch, seq, d_model), out.shape
    assert out.dtype == jnp.float32
    assert jnp.allclose(out, ref, rtol=1e-6, atol=1e-6), "mismatch vs reference gather"

    # Larger case: multiple grid blocks (dual-TC on v7x) + pad trim.
    positions2 = jax.random.randint(k2, (16, 1024), 0, max_len, dtype=jnp.int32)
    out2 = jax.block_until_ready(
        positional_encoding_forward(tables, positions2, use_pallas=True))
    ref2 = pe[positions2]
    assert out2.shape == (16, 1024, d_model)
    assert jnp.allclose(out2, ref2, rtol=1e-6, atol=1e-6), "mismatch on multi-block case"

    # Auto path: small n takes the plain-XLA gather fast path.
    out3 = jax.block_until_ready(positional_encoding_forward(tables, positions))
    assert jnp.allclose(out3, ref, rtol=1e-6, atol=1e-6), "mismatch on fast path"

    print("KERNEL_OK")
</pallas_src>

<mosaic_0001>
module attributes {stable_mosaic.version = 11 : i64} {
  func.func @_gather_kernel(%arg0: i32, %arg1: memref<8x4xi32, #tpu.memory_space<vmem>>, %arg2: memref<4x400xf32, #tpu.memory_space<vmem>>, %arg3: memref<1x400xf32, #tpu.memory_space<vmem>>, %arg4: memref<400x128xbf16, #tpu.memory_space<vmem>>, %arg5: memref<400x128xbf16, #tpu.memory_space<vmem>>, %arg6: memref<400x128xbf16, #tpu.memory_space<vmem>>, %arg7: memref<8x128xf32, #tpu.memory_space<vmem>>) attributes {dimension_semantics = [#tpu.dimension_semantics<parallel>], iteration_bounds = array<i64: 1>, scalar_prefetch = 0 : i64, scratch_operands = 0 : i64, tpu.core_type = #tpu.core_type<tc>, window_params = [{transform_indices = @transform_0, window_bounds = array<i64: 8, 4>}, {pipeline_mode = #tpu.pipeline_mode<synchronous>, transform_indices = @transform_1, window_bounds = array<i64: 4, 400>}, {pipeline_mode = #tpu.pipeline_mode<synchronous>, transform_indices = @transform_2, window_bounds = array<i64: 1, 400>}, {pipeline_mode = #tpu.pipeline_mode<synchronous>, transform_indices = @transform_3, window_bounds = array<i64: 400, 128>}, {pipeline_mode = #tpu.pipeline_mode<synchronous>, transform_indices = @transform_4, window_bounds = array<i64: 400, 128>}, {pipeline_mode = #tpu.pipeline_mode<synchronous>, transform_indices = @transform_5, window_bounds = array<i64: 400, 128>}, {transform_indices = @transform_6, window_bounds = array<i64: 8, 128>}]} {
    %c0 = arith.constant 0 : index
    %c0_0 = arith.constant 0 : index
    %0 = vector.load %arg1[%c0, %c0_0] : memref<8x4xi32, #tpu.memory_space<vmem>>, vector<8x4xi32>
    %1 = arith.sitofp %0 : vector<8x4xi32> to vector<8x4xf32>
    %c0_1 = arith.constant 0 : index
    %c0_2 = arith.constant 0 : index
    %2 = vector.load %arg2[%c0_1, %c0_2] : memref<4x400xf32, #tpu.memory_space<vmem>>, vector<4x400xf32>
    %cst = arith.constant dense<0.000000e+00> : vector<8x400xf32>
    %3 = tpu.matmul %1, %2, %cst {dimension_numbers = #tpu.dot_dimension_numbers<[1], [0], [0], [1], [0, 0, 1, 1], [], []>} : vector<8x4xf32>, vector<4x400xf32>, vector<8x400xf32> -> vector<8x400xf32>
    %c0_3 = arith.constant 0 : index
    %c0_4 = arith.constant 0 : index
    %4 = vector.load %arg3[%c0_3, %c0_4] : memref<1x400xf32, #tpu.memory_space<vmem>>, vector<1x400xf32>
    %5 = vector.broadcast %4 : vector<1x400xf32> to vector<8x400xf32>
    %6 = arith.cmpf oeq, %3, %5 : vector<8x400xf32>
    %7 = arith.extui %6 : vector<8x400xi1> to vector<8x400xi32>
    %8 = arith.sitofp %7 : vector<8x400xi32> to vector<8x400xf32>
    %9 = arith.truncf %8 : vector<8x400xf32> to vector<8x400xbf16>
    %c0_5 = arith.constant 0 : index
    %c0_6 = arith.constant 0 : index
    %10 = vector.load %arg4[%c0_5, %c0_6] : memref<400x128xbf16, #tpu.memory_space<vmem>>, vector<400x128xbf16>
    %cst_7 = arith.constant dense<0.000000e+00> : vector<8x128xf32>
    %11 = tpu.matmul %9, %10, %cst_7 {dimension_numbers = #tpu.dot_dimension_numbers<[1], [0], [0], [1], [0, 0, 1, 1], [], []>} : vector<8x400xbf16>, vector<400x128xbf16>, vector<8x128xf32> -> vector<8x128xf32>
    %c0_8 = arith.constant 0 : index
    %c0_9 = arith.constant 0 : index
    %12 = vector.load %arg5[%c0_8, %c0_9] : memref<400x128xbf16, #tpu.memory_space<vmem>>, vector<400x128xbf16>
    %cst_10 = arith.constant dense<0.000000e+00> : vector<8x128xf32>
    %13 = tpu.matmul %9, %12, %cst_10 {dimension_numbers = #tpu.dot_dimension_numbers<[1], [0], [0], [1], [0, 0, 1, 1], [], []>} : vector<8x400xbf16>, vector<400x128xbf16>, vector<8x128xf32> -> vector<8x128xf32>
    %14 = arith.addf %11, %13 : vector<8x128xf32>
    %c0_11 = arith.constant 0 : index
    %c0_12 = arith.constant 0 : index
    %15 = vector.load %arg6[%c0_11, %c0_12] : memref<400x128xbf16, #tpu.memory_space<vmem>>, vector<400x128xbf16>
    %cst_13 = arith.constant dense<0.000000e+00> : vector<8x128xf32>
    %16 = tpu.matmul %9, %15, %cst_13 {dimension_numbers = #tpu.dot_dimension_numbers<[1], [0], [0], [1], [0, 0, 1, 1], [], []>} : vector<8x400xbf16>, vector<400x128xbf16>, vector<8x128xf32> -> vector<8x128xf32>
    %17 = arith.addf %14, %16 : vector<8x128xf32>
    %c0_14 = arith.constant 0 : index
    %c0_15 = arith.constant 0 : index
    %18 = vector.load %arg7[%c0_14, %c0_15] : memref<8x128xf32, #tpu.memory_space<vmem>>, vector<8x128xf32>
    tpu.vector_store %arg7[%c0_14, %c0_15], %17 {strides = array<i32>} : memref<8x128xf32, #tpu.memory_space<vmem>>, vector<8x128xf32>,
    return
  }
  func.func @transform_0(%arg0: i32) -> (i32, i32) {
    %c0_i32 = arith.constant 0 : i32
    %c0_i32_0 = arith.constant 0 : i32
    return %arg0, %c0_i32 : i32, i32
  }
  func.func @transform_1(%arg0: i32) -> (i32, i32) {
    %c0_i32 = arith.constant 0 : i32
    %c0_i32_0 = arith.constant 0 : i32
    %c0_i32_1 = arith.constant 0 : i32
    return %c0_i32, %c0_i32_0 : i32, i32
  }
  func.func @transform_2(%arg0: i32) -> (i32, i32) {
    %c0_i32 = arith.constant 0 : i32
    %c0_i32_0 = arith.constant 0 : i32
    %c0_i32_1 = arith.constant 0 : i32
    return %c0_i32, %c0_i32_0 : i32, i32
  }
  func.func @transform_3(%arg0: i32) -> (i32, i32) {
    %c0_i32 = arith.constant 0 : i32
    %c0_i32_0 = arith.constant 0 : i32
    %c0_i32_1 = arith.constant 0 : i32
    return %c0_i32, %c0_i32_0 : i32, i32
  }
  func.func @transform_4(%arg0: i32) -> (i32, i32) {
    %c0_i32 = arith.constant 0 : i32
    %c0_i32_0 = arith.constant 0 : i32
    %c0_i32_1 = arith.constant 0 : i32
    return %c0_i32, %c0_i32_0 : i32, i32
  }
  func.func @transform_5(%arg0: i32) -> (i32, i32) {
    %c0_i32 = arith.constant 0 : i32
    %c0_i32_0 = arith.constant 0 : i32
    %c0_i32_1 = arith.constant 0 : i32
    return %c0_i32, %c0_i32_0 : i32, i32
  }
  func.func @transform_6(%arg0: i32) -> (i32, i32) {
    %c0_i32 = arith.constant 0 : i32
    %c0_i32_0 = arith.constant 0 : i32
    return %arg0, %c0_i32 : i32, i32
  }
}

</mosaic_0001>

<bundles_post_ra>
// kernel: positional_encoding_forward.1
= control target key start
LH: loop header
LB: loop body
LE: loop exit
PB: predicated region body
PF: predicated region fallthrough
CT: control target
= control target key end

     0   :  { %11 = vsyncpa [#allocation3], 0  ;;  %s1583_s0 = inlined_call_operand.vmem [shape: s32[8,4], index: 0, kind: input, shape index: {}]   ;;  %s1584_s1 = inlined_call_operand.vmem [shape: f32[4,400], index: 1, kind: input, shape index: {}]   ;;  %s1585_s2 = inlined_call_operand.vmem [shape: f32[1,400], index: 2, kind: input, shape index: {}]   ;;  %s1586_s3 = inlined_call_operand.hbm [shape: bf16[400,128], index: 3, kind: input, shape index: {}]   ;;  %s1587_s4 = inlined_call_operand.hbm [shape: bf16[400,128], index: 4, kind: input, shape index: {}]   ;;  %s1588_s5 = inlined_call_operand.hbm [shape: bf16[400,128], index: 5, kind: input, shape index: {}]   ;;  %s1589_s6 = inlined_call_operand.vmem [shape: f32[8,128], index: 6, kind: output, shape index: {}]  }
   0x1   :  { %12 = vsyncpa [#allocation5], 0  ;;  %s1439_s21 = smov [#allocation4]   ;;  %s1440_s23 = smov [#allocation2]  }
   0x2   :  { %s36_s22 = sshll.u32 %s1439_s21, 4  ;;  %s24_s24 = sshll.u32 %s1440_s23, 4  ;;  %s37_s22 = int_to_ptr.vmem [resolvable:$true] %s36_s22  ;;  %s25_s24 = int_to_ptr.vmem [resolvable:$true] %s24_s24 }
   0x3   :  { %s1383_s25 = scalar_lea.vmem %s37_s22, 3200  ;;  %p1388_p1 = scmp.lt.s32.totalorder %s37_s22, %s37_s22 }
   0x4   :  { %p1384_p0 = scmp.ne.s32.totalorder %s37_s22, %s1383_s25  ;;  %p1389_p2 = scmp.lt.s32.totalorder %s1383_s25, %s1383_s25 }
   0x6   :  { %p1390_p3 = por %p1389_p2, %p1388_p1 }
   0x8   :  { %p1391_p4 = pnand %p1390_p3, %p1384_p0 }
   0xa   :  { %1394 = shalt.err (!%p1391_p4)
}
   0xb   :  { %s1441_s26 = smov 64   ;;  %s1442_s27 = smov 4  }
   0xc   :  { %42 = dma.hbm_to_vmem [thread:$0]  %s1587_s4, 3200, %s37_s22, [#allocation5], %s1441_s26, %s1441_s26, %s1442_s27  }
   0xd   :  { %s1403_s30 = scalar_lea.vmem %s25_s24, 3200  ;;  %p1408_p6 = scmp.lt.s32.totalorder %s25_s24, %s25_s24 }
   0xe   :  { %p1404_p5 = scmp.ne.s32.totalorder %s25_s24, %s1403_s30  ;;  %p1409_p7 = scmp.lt.s32.totalorder %s1403_s30, %s1403_s30 }
  0x10   :  { %p1410_p8 = por %p1409_p7, %p1408_p6 }
  0x12   :  { %p1411_p9 = pnand %p1410_p8, %p1404_p5 }
  0x14   :  { %1414 = shalt.err (!%p1411_p9)
}
  0x15   :  { %30 = dma.hbm_to_vmem [thread:$0]  %s1586_s3, 3200, %s25_s24, [#allocation3], %s1441_s26, %s1441_s26, %s1442_s27  }
  0x16   :  { %s1443_s9 = smov [#allocation6]  }
  0x17   :  { %s48_s10 = sshll.u32 %s1443_s9, 4  ;;  %s49_s10 = int_to_ptr.vmem [resolvable:$true] %s48_s10 }
  0x18   :  { %s1423_s11 = scalar_lea.vmem %s49_s10, 3200  ;;  %p1428_p11 = scmp.lt.s32.totalorder %s49_s10, %s49_s10 }
  0x19   :  { %p1424_p10 = scmp.ne.s32.totalorder %s49_s10, %s1423_s11  ;;  %p1429_p12 = scmp.lt.s32.totalorder %s1423_s11, %s1423_s11 }
  0x1b   :  { %p1430_p13 = por %p1429_p12, %p1428_p11 }
  0x1d   :  { %p1431_p0 = pnand %p1430_p13, %p1424_p10 }
  0x1f   :  { %1434 = shalt.err (!%p1431_p0)
}
  0x20   :  { %54 = dma.hbm_to_vmem [thread:$0]  %s1588_s5, 3200, %s49_s10, [#allocation5], %s1441_s26, %s1441_s26, %s1442_s27  }
  0x21   :  { %1435 = dma.done.wait [#allocation3], 3200  }
  0x22   :  { %1436 = vsyncadd [#allocation3], 4294964096 }
  0x23   :  { %1437 = dma.done.wait [#allocation5], 6400  }
  0x24   :  { %1438 = vsyncadd [#allocation5], 4294960896  ;;  %v1444_v0 = vmov 0.0   ;;  %v1445_v1 = vmov 0   ;;  %v67_v2 = vld [vmem:[%s1584_s1] sm:$0xff]  ;;  %vm77_vm0 = vcmask 1043456   ;;  %v230_v34 = vlaneseq }
  0x25   :  { %150 = vmatprep.mubr.f32.mxu0 %v1444_v0  ;;  %560 = vmatprep.subr.bf16.mxu1 %v1445_v1  ;;  %v65_v3 = vld [vmem:[%s1583_s0] sm:$0xff]  ;;  %v68_v4 = vld [vmem:[%s1584_s1 + $0x8] sm:$0xff]  ;;  %v71_v5 = vcombine.high %v67_v2, %v67_v2  ;;  %vm73_vm1 = vcmask 31744   ;;  %v1303_v11 = vld [vmem:[#allocation4 + $0x70] sm:$0xff]   ;;  %v1446_v52 = vmov 1.0|1.0  }
  0x26   :  { %v66_v6 = vcvt.s32.f32 %v65_v3  ;;  %v72_v7 = vcombine.high %v68_v4, %v68_v4  ;;  %v1300_v8 = vld [vmem:[#allocation4 + $0x78] sm:$0xff]   ;;  %v1305_v12 = vld [vmem:[#allocation4 + $0xb0] sm:$0xff]   ;;  %v1306_v14 = vld [vmem:[#allocation4 + $0x68] sm:$0xff]   ;;  %v231_v35 = vshrl.u32 %v230_v34, 7  ;;  %vm516_vm8 = vcmask 130048  }
  0x27   :  { %1118 = vmatprep.subr.msk.mxu0 %vm77_vm0, %v71_v5  ;;  %v1302_v9 = vld [vmem:[#allocation4 + $0xb8] sm:$0xff]   ;;  %v1304_v13 = vld [vmem:[#allocation4 + $0x30] sm:$0xff]   ;;  %v1308_v15 = vld [vmem:[#allocation4 + $0xa8] sm:$0xff]  }
  0x28   :  { %1119 = vmatpush1.msk.msra.mxu0 %vm77_vm0, %v67_v2  ;;  %v1301_v10 = vld [vmem:[#allocation4 + $0x38] sm:$0xff]   ;;  %561 = vmatpush1.bf16.msra.mxu1 %v1302_v9  ;;  %v1307_v16 = vld [vmem:[#allocation4 + $0x28] sm:$0xff]   ;;  %v1309_v17 = vld [vmem:[#allocation4 + $0x60] sm:$0xff]   ;;  %v232_v36 = vsub.s32 0, %v231_v35  ;;  %v236_v38 = vsub.s32 1, %v231_v35  ;;  %v244_v41 = vsub.s32 3, %v231_v35 }
  0x29   :  { %1120 = vmatmul.mubr.msk.f32.vlgmr.msra.gmra.mxu0 %vm73_vm1, %v66_v6  ;;  %1121 = vmatprep.subr.msk.mxu0 %vm77_vm0, %v72_v7  ;;  %v1311_v18 = vld [vmem:[#allocation4 + $0xa0] sm:$0xff]   ;;  %v1312_v20 = vld [vmem:[#allocation4 + $0x58] sm:$0xff]   ;;  %v1315_v23 = vld [vmem:[#allocation4 + $0x50] sm:$0xff]   ;;  %v240_v43 = vsub.s32 2, %v231_v35 }
  0x2a   :  { %1122 = vmatpush1.msk.msra.mxu0 %vm77_vm0, %v68_v4  ;;  %221 = vmatprep.mubr.f32.mxu0 %v1444_v0  ;;  %v1310_v19 = vld [vmem:[#allocation4 + $0x20] sm:$0xff]   ;;  %v1314_v21 = vld [vmem:[#allocation4 + $0x98] sm:$0xff]   ;;  %v1317_v24 = vld [vmem:[#allocation4 + $0x90] sm:$0xff]  }
  0x2b   :  { %1224 = vmatprep.subr.bf16.mxu0 %v1300_v8  ;;  %562 = vmatprep.subr.bf16.mxu1 %v1445_v1  ;;  %v1313_v22 = vld [vmem:[#allocation4 + $0x18] sm:$0xff]   ;;  %v1316_v25 = vld [vmem:[#allocation4 + $0x10] sm:$0xff]   ;;  %v1318_v26 = vld [vmem:[#allocation4 + $0x48] sm:$0xff]  }
  0x2c   :  { %563 = vmatpush1.bf16.msra.mxu1 %v1305_v12  ;;  %v1319_v27 = vld [vmem:[#allocation4 + $0x8] sm:$0xff]   ;;  %v1321_v29 = vld [vmem:[#allocation4 + $0x40] sm:$0xff]   ;;  %v1324_v32 = vld [vmem:[#allocation2 + $0x78] sm:$0xff]  }
  0x2d   :  { %1123 = vmatmul.mubr.msk.f32.vlgmr.msra.gmra.mxu0 %vm73_vm1, %v66_v6  ;;  %564 = vmatprep.subr.bf16.mxu1 %v1445_v1  ;;  %v1320_v28 = vld [vmem:[#allocation4 + $0x88] sm:$0xff]   ;;  %v1322_v30 = vld [vmem:[#allocation4] sm:$0xff]   ;;  %v228_v37 = vld [vmem:[%s1585_s2] sm:$0xf] }
  0x2e   :  { %1225 = vmatpush3.bf16.msra.mxu0 %v1301_v10  ;;  %v1323_v31 = vld [vmem:[#allocation4 + $0x80] sm:$0xff]   ;;  %v233_v39 = vrot.slane %v228_v37, %v232_v36  ;;  %v237_v40 = vrot.slane %v228_v37, %v236_v38  ;;  %v245_v45 = vrot.slane %v228_v37, %v244_v41  ;;  %v1325_v46 = vld [vmem:[#allocation2 + $0x38] sm:$0xff]   ;;  %v241_v49 = vrot.slane %v228_v37, %v240_v43  ;;  %v1327_v50 = vld [vmem:[#allocation2 + $0x70] sm:$0xff]  }
  0x2f   :  { %1226 = vmatprep.subr.bf16.mxu0 %v1303_v11  ;;  %v1326_v33 = vld [vmem:[#allocation4 + $0xc0] sm:$0xff]   ;;  %v1328_v54 = vld [vmem:[#allocation2 + $0x30] sm:$0xff]   ;;  %v1329_v58 = vld [vmem:[#allocation2 + $0xb8] sm:$0xff]  }
  0x30   :  { %565 = vmatpush1.bf16.msra.mxu1 %v1308_v15  ;;  %v1330_v56 = vld [vmem:[#allocation2 + $0x68] sm:$0xff]   ;;  %v1333_v61 = vld [vmem:[#allocation2 + $0x60] sm:$0xff]   ;;  %v1332_v62 = vld [vmem:[#allocation2 + $0xb0] sm:$0xff]  }
  0x31   :  { %566 = vmatprep.subr.bf16.mxu1 %v1445_v1  ;;  %v1331_v60 = vld [vmem:[#allocation2 + $0x28] sm:$0xff]   ;;  %v1334_v63 = vld [vmem:[#allocation2 + $0x20] sm:$0xff]   ;;  %v1337_v3 = vld [vmem:[#allocation2 + $0x18] sm:$0xff]  }
  0x32   :  { %1227 = vmatpush3.bf16.msra.mxu0 %v1304_v13  ;;  %v1335_v2 = vld [vmem:[#allocation2 + $0xa8] sm:$0xff]   ;;  %v1339_v4 = vld [vmem:[#allocation2 + $0x50] sm:$0xff]   ;;  %v1338_v5 = vld [vmem:[#allocation2 + $0xa0] sm:$0xff]  }
  0x33   :  { %1228 = vmatprep.subr.bf16.mxu0 %v1306_v14  ;;  %v1340_v6 = vld [vmem:[#allocation2 + $0x10] sm:$0xff]   ;;  %v1342_v7 = vld [vmem:[#allocation2 + $0x48] sm:$0xff]   ;;  %v1341_v8 = vld [vmem:[#allocation2 + $0x98] sm:$0xff]  }
  0x34   :  { %567 = vmatpush1.bf16.msra.mxu1 %v1311_v18  ;;  %v1343_v9 = vld [vmem:[#allocation2 + $0x8] sm:$0xff]   ;;  %v1345_v10 = vld [vmem:[#allocation2 + $0x40] sm:$0xff]   ;;  %v1344_v11 = vld [vmem:[#allocation2 + $0x90] sm:$0xff]  }
  0x35   :  { %568 = vmatprep.subr.bf16.mxu1 %v1445_v1  ;;  %v1346_v12 = vld [vmem:[#allocation2] sm:$0xff]   ;;  %v1348_v13 = vld [vmem:[#allocation6 + $0x78] sm:$0xff]   ;;  %v1369_v34 = vld [vmem:[#allocation6 + $0x40] sm:$0xff]  }
  0x36   :  { %1229 = vmatpush3.bf16.msra.mxu0 %v1307_v16  ;;  %v1347_v14 = vld [vmem:[#allocation2 + $0x88] sm:$0xff]   ;;  %v1351_v16 = vld [vmem:[#allocation6 + $0x70] sm:$0xff]   ;;  %v1370_v36 = vld [vmem:[#allocation6] sm:$0xff]  }
  0x37   :  { %1230 = vmatprep.subr.bf16.mxu0 %v1309_v17  ;;  %v1349_v15 = vld [vmem:[#allocation6 + $0x38] sm:$0xff]   ;;  %v1350_v17 = vld [vmem:[#allocation2 + $0x80] sm:$0xff]   ;;  %v1372_v38 = vld [vmem:[#allocation6 + $0x88] sm:$0xff]  }
  0x38   :  { %569 = vmatpush1.bf16.msra.mxu1 %v1314_v21  ;;  %v1352_v18 = vld [vmem:[#allocation6 + $0x30] sm:$0xff]   ;;  %v1355_v21 = vld [vmem:[#allocation6 + $0x28] sm:$0xff]   ;;  %v1368_v35 = vld [vmem:[#allocation6 + $0x98] sm:$0xff]  }
  0x39   :  { %570 = vmatprep.subr.bf16.mxu1 %v1445_v1  ;;  %v1371_v37 = vld [vmem:[#allocation6 + $0x90] sm:$0xff]  }
  0x3a   :  { %1231 = vmatpush3.bf16.msra.mxu0 %v1310_v19  ;;  %v1354_v19 = vld [vmem:[#allocation6 + $0x68] sm:$0xff]  }
  0x3b   :  { %1232 = vmatprep.subr.bf16.mxu0 %v1312_v20  ;;  %v1353_v20 = vld [vmem:[#allocation2 + $0xc0] sm:$0xff]  }
  0x3c   :  { %571 = vmatpush1.bf16.msra.mxu1 %v1317_v24  ;;  %v1358_v24 = vld [vmem:[#allocation6 + $0x20] sm:$0xff]  }
  0x3d   :  { %572 = vmatprep.subr.bf16.mxu1 %v1445_v1 }
  0x3e   :  { %1233 = vmatpush3.bf16.msra.mxu0 %v1313_v22  ;;  %v1357_v22 = vld [vmem:[#allocation6 + $0x60] sm:$0xff]  }
  0x3f   :  { %1234 = vmatprep.subr.bf16.mxu0 %v1315_v23  ;;  %v1356_v23 = vld [vmem:[#allocation6 + $0xb8] sm:$0xff]  }
  0x40   :  { %573 = vmatpush1.bf16.msra.mxu1 %v1320_v28  ;;  %v1363_v28 = vld [vmem:[#allocation6 + $0x50] sm:$0xff]  }
  0x41   :  { %574 = vmatprep.subr.bf16.mxu1 %v1445_v1 }
  0x42   :  { %1235 = vmatpush3.bf16.msra.mxu0 %v1316_v25  ;;  %v1360_v25 = vld [vmem:[#allocation6 + $0x58] sm:$0xff]  }
  0x43   :  { %1236 = vmatprep.subr.bf16.mxu0 %v1318_v26  ;;  %v1359_v26 = vld [vmem:[#allocation6 + $0xb0] sm:$0xff]  }
  0x44   :  { %575 = vmatpush1.bf16.msra.mxu1 %v1323_v31  ;;  %v1366_v31 = vld [vmem:[#allocation6 + $0x48] sm:$0xff]  }
  0x45   :  { %590 = vmatprep.subr.bf16.mxu1 %v1445_v1 }
  0x46   :  { %1237 = vmatpush3.bf16.msra.mxu0 %v1319_v27  ;;  %v1361_v27 = vld [vmem:[#allocation6 + $0x18] sm:$0xff]  }
  0x47   :  { %1238 = vmatprep.subr.bf16.mxu0 %v1321_v29  ;;  %v1362_v29 = vld [vmem:[#allocation6 + $0xa8] sm:$0xff]  }
  0x48   :  { %591 = vmatpush2.bf16.msra.mxu1 %v1326_v33  ;;  %v1367_v33 = vld [vmem:[#allocation6 + $0x8] sm:$0xff]  }
  0x49   :  { %790 = vmatprep.subr.bf16.mxu1 %v1445_v1 }
  0x4a   :  { %1239 = vmatpush3.bf16.msra.mxu0 %v1322_v30  ;;  %v1364_v30 = vld [vmem:[#allocation6 + $0x10] sm:$0xff]  }
  0x4b   :  { %1246 = vmatprep.subr.bf16.mxu0 %v1324_v32  ;;  %v1365_v32 = vld [vmem:[#allocation6 + $0xa0] sm:$0xff]  }
  0xe9   :  { %v152_v42 = vpop.f32.mrf.mxu0 }
  0xea   :  { %vm250_vm2 = vcmp.eq.f32.partialorder %v152_v42, %v233_v39  ;;  %v1373_v39 = vld [vmem:[#allocation6 + $0x80] sm:$0xff]  }
  0xeb   :  { %v154_v44 = vpop.f32.mrf.mxu0  ;;  %vm1519_vm5 = vmpackc.low %vm250_vm2, %vm250_vm2 }
  0xec   :  { %vm251_vm3 = vcmp.eq.f32.partialorder %v154_v44, %v237_v40  ;;  %v1374_v40 = vld [vmem:[#allocation6 + $0xc0] sm:$0xff]  }
  0xed   :  { %vm1515_vm4 = vmpackc.low %vm251_vm3, %vm251_vm3  ;;  %v223_v48 = vpop.f32.mrf.mxu0 }
  0xee   :  { %1154 = vmatprep.mubr.msk.bf16.mxu0 %vm1515_vm4, %v1446_v52  ;;  %vm252_vm7 = vcmp.eq.f32.partialorder %v223_v48, %v241_v49 }
  0xef   :  { %v225_v53 = vpop.f32.mrf.mxu0  ;;  %1156 = vmatmul.mubr.msk.bf16.vlgmr.msra.gmra.mxu0 %vm1519_vm5, %v1446_v52  ;;  %vm1535_vm9 = vmpackc.low %vm252_vm7, %vm252_vm7 }
  0xf0   :  { %vm253_vm6 = vcmp.eq.f32.partialorder %v225_v53, %v245_v45  ;;  %1247 = vmatpush3.bf16.msra.mxu0 %v1325_v46  ;;  %1186 = vmatprep.mubr.msk.bf16.mxu0 %vm1515_vm4, %v1446_v52 }
  0xf1   :  { %v1127_v55 = vsel %vm253_vm6, 1.0, %v1444_v0  ;;  %1248 = vmatprep.subr.bf16.mxu0 %v1327_v50  ;;  %v1336_v0 = vld [vmem:[#allocation2 + $0x58] sm:$0xff]  }
  0xf2   :  { %v1533_v57 = vpack.c.bf16 %v1127_v55, %v1127_v55 }
  0xf4   :  { %1249 = vmatpush3.bf16.msra.mxu0 %v1328_v54  ;;  %1157 = vmatprep.mubr.msk.bf16.mxu1 %vm516_vm8, %v1533_v57 }
  0xf5   :  { %1159 = vmatmul.mubr.msk.bf16.vlgmr.msra.gmra.mxu1 %vm1535_vm9, %v1446_v52  ;;  %1250 = vmatprep.subr.bf16.mxu0 %v1330_v56 }
  0xf6   :  { %791 = vmatpush1.bf16.msra.mxu1 %v1329_v58  ;;  %1189 = vmatprep.mubr.msk.bf16.mxu1 %vm516_vm8, %v1533_v57 }
  0xf7   :  { %792 = vmatprep.subr.bf16.mxu1 %v1445_v1 }
  0xf8   :  { %1251 = vmatpush3.bf16.msra.mxu0 %v1331_v60 }
  0xf9   :  { %1252 = vmatprep.subr.bf16.mxu0 %v1333_v61 }
  0xfa   :  { %793 = vmatpush1.bf16.msra.mxu1 %v1332_v62 }
  0xfb   :  { %794 = vmatprep.subr.bf16.mxu1 %v1445_v1 }
  0xfc   :  { %1253 = vmatpush3.bf16.msra.mxu0 %v1334_v63 }
  0xfd   :  { %1254 = vmatprep.subr.bf16.mxu0 %v1336_v0 }
  0xfe   :  { %795 = vmatpush1.bf16.msra.mxu1 %v1335_v2 }
  0xff   :  { %796 = vmatprep.subr.bf16.mxu1 %v1445_v1 }
 0x100   :  { %1255 = vmatpush3.bf16.msra.mxu0 %v1337_v3 }
 0x101   :  { %1256 = vmatprep.subr.bf16.mxu0 %v1339_v4 }
 0x102   :  { %797 = vmatpush1.bf16.msra.mxu1 %v1338_v5 }
 0x103   :  { %798 = vmatprep.subr.bf16.mxu1 %v1445_v1 }
 0x104   :  { %1257 = vmatpush3.bf16.msra.mxu0 %v1340_v6 }
 0x105   :  { %1258 = vmatprep.subr.bf16.mxu0 %v1342_v7 }
 0x106   :  { %799 = vmatpush1.bf16.msra.mxu1 %v1341_v8 }
 0x107   :  { %800 = vmatprep.subr.bf16.mxu1 %v1445_v1 }
 0x108   :  { %1259 = vmatpush3.bf16.msra.mxu0 %v1343_v9 }
 0x109   :  { %1260 = vmatprep.subr.bf16.mxu0 %v1345_v10 }
 0x10a   :  { %801 = vmatpush1.bf16.msra.mxu1 %v1344_v11 }
 0x10b   :  { %802 = vmatprep.subr.bf16.mxu1 %v1445_v1 }
 0x10c   :  { %1261 = vmatpush3.bf16.msra.mxu0 %v1346_v12 }
 0x10d   :  { %1268 = vmatprep.subr.bf16.mxu0 %v1348_v13 }
 0x10e   :  { %803 = vmatpush1.bf16.msra.mxu1 %v1347_v14 }
 0x10f   :  { %1188 = vmatmul.mubr.msk.bf16.vlgmr.msra.gmra.mxu0 %vm1519_vm5, %v1446_v52  ;;  %804 = vmatprep.subr.bf16.mxu1 %v1445_v1 }
 0x110   :  { %1269 = vmatpush3.bf16.msra.mxu0 %v1349_v15  ;;  %1218 = vmatprep.mubr.msk.bf16.mxu0 %vm1515_vm4, %v1446_v52 }
 0x111   :  { %1270 = vmatprep.subr.bf16.mxu0 %v1351_v16 }
 0x112   :  { %805 = vmatpush1.bf16.msra.mxu1 %v1350_v17 }
 0x113   :  { %820 = vmatprep.subr.bf16.mxu1 %v1445_v1 }
 0x114   :  { %1271 = vmatpush3.bf16.msra.mxu0 %v1352_v18 }
 0x115   :  { %1272 = vmatprep.subr.bf16.mxu0 %v1354_v19 }
 0x116   :  { %821 = vmatpush2.bf16.msra.mxu1 %v1353_v20 }
 0x117   :  { %1070 = vmatprep.subr.bf16.mxu1 %v1445_v1 }
 0x118   :  { %1273 = vmatpush3.bf16.msra.mxu0 %v1355_v21 }
 0x119   :  { %1191 = vmatmul.mubr.msk.bf16.vlgmr.msra.gmra.mxu1 %vm1535_vm9, %v1446_v52  ;;  %1274 = vmatprep.subr.bf16.mxu0 %v1357_v22 }
 0x11a   :  { %1071 = vmatpush1.bf16.msra.mxu1 %v1356_v23  ;;  %1221 = vmatprep.mubr.msk.bf16.mxu1 %vm516_vm8, %v1533_v57 }
 0x11b   :  { %1072 = vmatprep.subr.bf16.mxu1 %v1445_v1 }
 0x11c   :  { %1275 = vmatpush3.bf16.msra.mxu0 %v1358_v24 }
 0x11d   :  { %1276 = vmatprep.subr.bf16.mxu0 %v1360_v25 }
 0x11e   :  { %1073 = vmatpush1.bf16.msra.mxu1 %v1359_v26 }
 0x11f   :  { %1074 = vmatprep.subr.bf16.mxu1 %v1445_v1 }
 0x120   :  { %1277 = vmatpush3.bf16.msra.mxu0 %v1361_v27 }
 0x121   :  { %1278 = vmatprep.subr.bf16.mxu0 %v1363_v28 }
 0x122   :  { %1075 = vmatpush1.bf16.msra.mxu1 %v1362_v29 }
 0x123   :  { %1076 = vmatprep.subr.bf16.mxu1 %v1445_v1 }
 0x124   :  { %1279 = vmatpush3.bf16.msra.mxu0 %v1364_v30 }
 0x125   :  { %1280 = vmatprep.subr.bf16.mxu0 %v1366_v31 }
 0x126   :  { %1077 = vmatpush1.bf16.msra.mxu1 %v1365_v32 }
 0x127   :  { %1078 = vmatprep.subr.bf16.mxu1 %v1445_v1 }
 0x128   :  { %1281 = vmatpush3.bf16.msra.mxu0 %v1367_v33 }
 0x129   :  { %1282 = vmatprep.subr.bf16.mxu0 %v1369_v34 }
 0x12a   :  { %1079 = vmatpush1.bf16.msra.mxu1 %v1368_v35 }
 0x12b   :  { %1080 = vmatprep.subr.bf16.mxu1 %v1445_v1 }
 0x12c   :  { %1283 = vmatpush3.bf16.msra.mxu0 %v1370_v36 }
 0x12e   :  { %1081 = vmatpush1.bf16.msra.mxu1 %v1371_v37 }
 0x12f   :  { %1220 = vmatmul.mubr.msk.bf16.vlgmr.msra.gmra.mxu0 %vm1519_vm5, %v1446_v52  ;;  %1082 = vmatprep.subr.bf16.mxu1 %v1445_v1 }
 0x132   :  { %1083 = vmatpush1.bf16.msra.mxu1 %v1372_v38 }
 0x133   :  { %1084 = vmatprep.subr.bf16.mxu1 %v1445_v1 }
 0x136   :  { %1085 = vmatpush1.bf16.msra.mxu1 %v1373_v39 }
 0x137   :  { %1100 = vmatprep.subr.bf16.mxu1 %v1445_v1 }
 0x13a   :  { %1101 = vmatpush2.bf16.msra.mxu1 %v1374_v40 }
 0x13d   :  { %1223 = vmatmul.mubr.msk.bf16.vlgmr.msra.gmra.mxu1 %vm1535_vm9, %v1446_v52 }
 0x1af   :  { %v1240_v41 = vpop.f32.mrf.mxu0 }
 0x1b1   :  { %v1241_v42 = vpop.f32.mrf.mxu0 }
 0x1b2   :  { %v1242_v43 = vadd.f32 %v1241_v42, %v1240_v41 }
 0x1b3   :  { %v1243_v44 = vpop.f32.mrf.mxu0 }
 0x1b5   :  { %v1244_v45 = vpop.f32.mrf.mxu0  ;;  %v594_v46 = vpop.f32.mrf.mxu1 }
 0x1b6   :  { %v595_v47 = vadd.f32 %v1242_v43, %v594_v46 }
 0x1b7   :  { %v596_v48 = vpop.f32.mrf.mxu1 }
 0x1b9   :  { %v597_v49 = vpop.f32.mrf.mxu1 }
 0x1bb   :  { %v598_v50 = vpop.f32.mrf.mxu1 }
 0x1cf   :  { %v1262_v51 = vpop.f32.mrf.mxu0 }
 0x1d1   :  { %v1263_v53 = vpop.f32.mrf.mxu0 }
 0x1d2   :  { %v1264_v62 = vadd.f32 %v1263_v53, %v1262_v51 }
 0x1d3   :  { %v1265_v54 = vpop.f32.mrf.mxu0 }
 0x1d4   :  { %v785_v63 = vadd.f32 %v1264_v62, %v595_v47 }
 0x1d5   :  { %v1266_v55 = vpop.f32.mrf.mxu0 }
 0x1d9   :  { %v824_v1 = vpop.f32.mrf.mxu1 }
 0x1da   :  { %v825_v3 = vadd.f32 %v824_v1, %v785_v63 }
 0x1db   :  { %v826_v56 = vpop.f32.mrf.mxu1 }
 0x1dd   :  { %v827_v57 = vpop.f32.mrf.mxu1 }
 0x1df   :  { %v828_v58 = vpop.f32.mrf.mxu1 }
 0x1ef   :  { %v1284_v59 = vpop.f32.mrf.mxu0 }
 0x1f1   :  { %v1285_v52 = vpop.f32.mrf.mxu0 }
 0x1f2   :  { %v1286_v0 = vadd.f32 %v1285_v52, %v1284_v59 }
 0x1f3   :  { %v1287_v60 = vpop.f32.mrf.mxu0 }
 0x1f5   :  { %v1288_v61 = vpop.f32.mrf.mxu0 }
 0x1fd   :  { %v1104_v2 = vpop.f32.mrf.mxu1 }
 0x1fe   :  { %v1105_v4 = vadd.f32 %v1286_v0, %v1104_v2 }
 0x1ff   :  { %v1106_v5 = vpop.f32.mrf.mxu1 }
 0x200   :  { %v1110_v6 = vadd.f32 %v1105_v4, %v825_v3 }
 0x201   :  { %v1107_v7 = vpop.f32.mrf.mxu1 }
 0x202   :  { %1111 = vst [vmem:[%s1589_s6] sm:$0xff] %v1110_v6 }
 0x203   :  { %v1108_v8 = vpop.f32.mrf.mxu1 }
 0x204   :  { %1116 = vsyncpa [#allocation3], 1 }
 0x205   :  { %1117 = vsyncpa [#allocation5], 1 }

</bundles_post_ra>
